<compile_context>
chip_gen: v7x
topology: tpu7x:2x2x1
jax: 0.10.0
libtpu: 0.0.40
codegen_flags: <defaults>
</compile_context>

<pallas_src>
import functools

import jax
import jax.numpy as jnp
import numpy as np
from jax.experimental import pallas as pl
from jax.experimental.pallas import tpu as pltpu


def _round_up(x, m):
    return ((x + m - 1) // m) * m


def _dpsh_kernel(u_ref, y_ref, Ut_ref, Yt_ref, acc_ref, *,
                 n_valid, n_pad, tile_n, tiles_per_core):
    """One (core, N-tile) step: two MXU matmuls + f32 likelihood, accumulated
    into a resident (B, tile_n) VMEM output block (deferred reduction)."""
    c = pl.program_id(0)   # parallel split of N (dual-TC on v7x)
    k = pl.program_id(1)   # sequential tile index within this split

    @pl.when(k == 0)
    def _():
        acc_ref[...] = jnp.zeros_like(acc_ref)

    u = u_ref[...]       # (B, bit)
    y = y_ref[...]       # (B, n_class)
    Ut = Ut_ref[...]     # (bit, tile_n)      lane-dense bank tile
    Yt = Yt_ref[...]     # (n_class, tile_n)

    # inner_product = u @ U.T * 0.5  -> (B, tile_n), f32 MXU accumulation.
    ip = jax.lax.dot_general(u, Ut, (((1,), (0,)), ((), ())),
                             preferred_element_type=jnp.float32) * 0.5
    # s = (y @ Y.T > 0)
    sim = jax.lax.dot_general(y, Yt, (((1,), (0,)), ((), ())),
                              preferred_element_type=jnp.float32)
    s = (sim > 0).astype(jnp.float32)

    # log(1 + exp(-|ip|)) + max(ip, 0) - s * ip     (f32 VPU/EUP)
    ll = jnp.log1p(jnp.exp(-jnp.abs(ip))) + jnp.maximum(ip, 0.0) - s * ip

    if n_valid != n_pad:  # static: mask padded bank columns of the ragged tail
        col = ((c * tiles_per_core + k) * tile_n
               + jax.lax.broadcasted_iota(jnp.int32, ll.shape, 1))
        ll = jnp.where(col < n_valid, ll, 0.0)

    # Deferred reduction: pure VPU adds each step; full reduce in the wrapper.
    acc_ref[...] += ll


@functools.partial(jax.jit, static_argnames=("alpha", "tile_n", "num_cores"))
def dpsh_loss(u, y, ind, U_T, Y_T, *, alpha=0.1, tile_n=1024, num_cores=2):
    """DPSHLoss.forward.

    Banks are kept TRANSPOSED (lane-dense) state: U_T (bit, N), Y_T (n_class, N),
    and may be float32 or bfloat16 (bf16 halves the HBM streaming cost).
    Returns (loss, U_T_updated, Y_T_updated).
    """
    u = u.astype(jnp.float32)
    yf = y.astype(jnp.float32)

    B, bit = u.shape
    n_class = yf.shape[1]
    assert U_T.shape[0] == bit and Y_T.shape[0] == n_class
    N = U_T.shape[1]

    # State update (glue): self.U[ind,:] = u ; self.Y[ind,:] = y  (transposed).
    U_T = U_T.at[:, ind].set(u.T.astype(U_T.dtype))
    Y_T = Y_T.at[:, ind].set(yf.T.astype(Y_T.dtype))

    # --- tiling over the streamed N dimension --------------------------------
    num_cores = max(1, int(num_cores))
    per_core = -(-N // num_cores)
    # Big tiles to amortize per-step overhead, but never bigger than needed.
    # (For huge n_class on v7x's smaller VMEM, shrink tile_n at the call site.)
    tile_n = max(128, min(int(tile_n), _round_up(per_core, 128)))
    tiles_per_core = -(-per_core // tile_n)
    n_pad = num_cores * tiles_per_core * tile_n

    U_k = U_T if n_pad == N else jnp.pad(U_T, ((0, 0), (0, n_pad - N)))
    Y_k = Y_T if n_pad == N else jnp.pad(Y_T, ((0, 0), (0, n_pad - N)))
    # Matmul operands match the bank dtype (bf16 banks -> bf16 MXU operands);
    # likelihood math and accumulation stay f32 inside the kernel.
    u_k = u.astype(U_k.dtype)
    y_k = yf.astype(Y_k.dtype)

    kernel = functools.partial(
        _dpsh_kernel, n_valid=N, n_pad=n_pad, tile_n=tile_n,
        tiles_per_core=tiles_per_core)

    acc = pl.pallas_call(
        kernel,
        out_shape=jax.ShapeDtypeStruct((num_cores, B, tile_n), jnp.float32),
        grid_spec=pltpu.PrefetchScalarGridSpec(
            num_scalar_prefetch=0,
            grid=(num_cores, tiles_per_core),
            in_specs=[
                pl.BlockSpec((B, bit), lambda c, k: (0, 0)),
                pl.BlockSpec((B, n_class), lambda c, k: (0, 0)),
                pl.BlockSpec((bit, tile_n),
                             lambda c, k: (0, c * tiles_per_core + k)),
                pl.BlockSpec((n_class, tile_n),
                             lambda c, k: (0, c * tiles_per_core + k)),
            ],
            # Per-core resident accumulator block (revisited along k).
            out_specs=pl.BlockSpec((None, B, tile_n), lambda c, k: (c, 0, 0)),
        ),
        compiler_params=pltpu.CompilerParams(
            dimension_semantics=("parallel", "arbitrary")),
    )(u_k, y_k, U_k, Y_k)

    likelihood_loss = jnp.sum(acc) / jnp.float32(B * N)

    # Quantization term: tiny (B, bit) elementwise -> plain-JAX glue.
    d = u - jnp.sign(u)
    quantization_loss = jnp.float32(alpha) * jnp.sum(d * d) / jnp.float32(B * bit)

    return likelihood_loss + quantization_loss, U_T, Y_T


def _reference(u, y, ind, U, Y, alpha):
    """Pure-JAX reference reproducing the PyTorch forward (row-major banks)."""
    u = u.astype(jnp.float32)
    yf = y.astype(jnp.float32)
    U = U.at[ind, :].set(u)
    Y = Y.at[ind, :].set(yf)
    s = (yf @ Y.T > 0).astype(jnp.float32)
    ip = u @ U.T * 0.5
    ll = jnp.log1p(jnp.exp(-jnp.abs(ip))) + jnp.maximum(ip, 0.0) - s * ip
    likelihood = jnp.mean(ll)
    quant = alpha * jnp.mean((u - jnp.sign(u)) ** 2)
    return likelihood + quant


if __name__ == "__main__":
    # config: num_train=300 (exercises the masked ragged tail), bit=32,
    # n_class=16, alpha=0.1 ; batch B=8
    num_train, bit, n_class, B = 300, 32, 16, 8
    alpha = 0.1

    key = jax.random.PRNGKey(0)
    k_u, k_y, k_i, k_U, k_Y = jax.random.split(key, 5)

    u = jax.random.normal(k_u, (B, bit), dtype=jnp.float32)
    y = (jax.random.uniform(k_y, (B, n_class)) > 0.7).astype(jnp.float32)
    ind = jax.random.permutation(k_i, num_train)[:B]

    U0 = 0.1 * jax.random.normal(k_U, (num_train, bit), dtype=jnp.float32)
    Y0 = (jax.random.uniform(k_Y, (num_train, n_class)) > 0.8).astype(jnp.float32)

    ref = _reference(u, y, ind, U0, Y0, alpha)

    # ---- float32 banks (stored transposed / lane-dense) ----------------------
    loss, UT_new, YT_new = dpsh_loss(u, y, ind, U0.T, Y0.T,
                                     alpha=alpha, tile_n=1024, num_cores=2)
    loss = jax.block_until_ready(loss)
    # tolerance covers MXU-vs-XLA f32 matmul pass differences
    np.testing.assert_allclose(np.asarray(loss), np.asarray(ref),
                               rtol=5e-4, atol=5e-4)
    np.testing.assert_array_equal(np.asarray(UT_new.T),
                                  np.asarray(U0.at[ind, :].set(u)))
    np.testing.assert_array_equal(np.asarray(YT_new.T),
                                  np.asarray(Y0.at[ind, :].set(y)))

    # ---- bfloat16 banks: halves HBM streaming of the bank (v6e/v7x native) ---
    loss16, _, _ = dpsh_loss(u, y, ind,
                             U0.T.astype(jnp.bfloat16),
                             Y0.T.astype(jnp.bfloat16),
                             alpha=alpha, tile_n=1024, num_cores=2)
    loss16 = jax.block_until_ready(loss16)
    np.testing.assert_allclose(np.asarray(loss16), np.asarray(ref),
                               rtol=2e-2, atol=2e-2)

    print("KERNEL_OK")
</pallas_src>

<mosaic_0001>
module attributes {stable_mosaic.version = 11 : i64} {
  func.func @_dpsh_kernel(%arg0: i32, %arg1: i32, %arg2: memref<8x32xf32, #tpu.memory_space<vmem>>, %arg3: memref<8x16xf32, #tpu.memory_space<vmem>>, %arg4: memref<32x256xf32, #tpu.memory_space<vmem>>, %arg5: memref<16x256xf32, #tpu.memory_space<vmem>>, %arg6: memref<1x8x256xf32, #tpu.memory_space<vmem>>) attributes {dimension_semantics = [#tpu.dimension_semantics<parallel>, #tpu.dimension_semantics<arbitrary>], iteration_bounds = array<i64: 2, 1>, scalar_prefetch = 0 : i64, scratch_operands = 0 : i64, tpu.core_type = #tpu.core_type<tc>, window_params = [{pipeline_mode = #tpu.pipeline_mode<synchronous>, transform_indices = @transform_0, window_bounds = array<i64: 8, 32>}, {pipeline_mode = #tpu.pipeline_mode<synchronous>, transform_indices = @transform_1, window_bounds = array<i64: 8, 16>}, {transform_indices = @transform_2, window_bounds = array<i64: 32, 256>}, {transform_indices = @transform_3, window_bounds = array<i64: 16, 256>}, {transform_indices = @transform_4, window_bounds = array<i64: 1, 8, 256>}]} {
    %c0_i32 = arith.constant 0 : i32
    %0 = arith.cmpi eq, %arg1, %c0_i32 : i32
    %1 = arith.extui %0 : i1 to i32
    %c0_i32_0 = arith.constant 0 : i32
    %2 = arith.cmpi ne, %1, %c0_i32_0 : i32
    scf.if %2 {
      %cst_20 = arith.constant 0.000000e+00 : f32
      %41 = vector.broadcast %cst_20 : f32 to vector<8x256xf32>
      %c0_21 = arith.constant 0 : index
      %c0_22 = arith.constant 0 : index
      %c0_23 = arith.constant 0 : index
      %42 = vector.load %arg6[%c0_21, %c0_22, %c0_23] : memref<1x8x256xf32, #tpu.memory_space<vmem>>, vector<1x8x256xf32>
      %43 = vector.shape_cast %42 : vector<1x8x256xf32> to vector<8x256xf32>
      %44 = vector.shape_cast %41 : vector<8x256xf32> to vector<1x8x256xf32>
      tpu.vector_store %arg6[%c0_21, %c0_22, %c0_23], %44 {strides = array<i32>} : memref<1x8x256xf32, #tpu.memory_space<vmem>>, vector<1x8x256xf32>,
    } else {
    }
    %c0 = arith.constant 0 : index
    %c0_1 = arith.constant 0 : index
    %3 = vector.load %arg2[%c0, %c0_1] : memref<8x32xf32, #tpu.memory_space<vmem>>, vector<8x32xf32>
    %c0_2 = arith.constant 0 : index
    %c0_3 = arith.constant 0 : index
    %4 = vector.load %arg3[%c0_2, %c0_3] : memref<8x16xf32, #tpu.memory_space<vmem>>, vector<8x16xf32>
    %c0_4 = arith.constant 0 : index
    %c0_5 = arith.constant 0 : index
    %5 = vector.load %arg4[%c0_4, %c0_5] : memref<32x256xf32, #tpu.memory_space<vmem>>, vector<32x256xf32>
    %c0_6 = arith.constant 0 : index
    %c0_7 = arith.constant 0 : index
    %6 = vector.load %arg5[%c0_6, %c0_7] : memref<16x256xf32, #tpu.memory_space<vmem>>, vector<16x256xf32>
    %cst = arith.constant dense<0.000000e+00> : vector<8x256xf32>
    %7 = tpu.matmul %3, %5, %cst {dimension_numbers = #tpu.dot_dimension_numbers<[1], [0], [0], [1], [0, 0, 1, 1], [], []>} : vector<8x32xf32>, vector<32x256xf32>, vector<8x256xf32> -> vector<8x256xf32>
    %cst_8 = arith.constant 5.000000e-01 : f32
    %8 = vector.broadcast %cst_8 : f32 to vector<8x256xf32>
    %9 = arith.mulf %7, %8 : vector<8x256xf32>
    %cst_9 = arith.constant dense<0.000000e+00> : vector<8x256xf32>
    %10 = tpu.matmul %4, %6, %cst_9 {dimension_numbers = #tpu.dot_dimension_numbers<[1], [0], [0], [1], [0, 0, 1, 1], [], []>} : vector<8x16xf32>, vector<16x256xf32>, vector<8x256xf32> -> vector<8x256xf32>
    %cst_10 = arith.constant 0.000000e+00 : f32
    %11 = vector.broadcast %cst_10 : f32 to vector<8x256xf32>
    %12 = arith.cmpf ogt, %10, %11 : vector<8x256xf32>
    %13 = arith.extui %12 : vector<8x256xi1> to vector<8x256xi32>
    %14 = arith.sitofp %13 : vector<8x256xi32> to vector<8x256xf32>
    %15 = math.absf %9 : vector<8x256xf32>
    %cst_11 = arith.constant 0.000000e+00 : f32
    %16 = vector.broadcast %cst_11 : f32 to vector<8x256xf32>
    %17 = arith.subf %16, %15 : vector<8x256xf32>
    %18 = math.exp %17 : vector<8x256xf32>
    %19 = math.log1p %18 : vector<8x256xf32>
    %cst_12 = arith.constant 0.000000e+00 : f32
    %20 = vector.broadcast %cst_12 : f32 to vector<8x256xf32>
    %21 = arith.maximumf %9, %20 : vector<8x256xf32>
    %22 = arith.addf %19, %21 : vector<8x256xf32>
    %23 = arith.mulf %14, %9 : vector<8x256xf32>
    %24 = arith.subf %22, %23 : vector<8x256xf32>
    %c1_i32 = arith.constant 1 : i32
    %25 = arith.muli %arg0, %c1_i32 : i32
    %26 = arith.addi %25, %arg1 : i32
    %c256_i32 = arith.constant 256 : i32
    %27 = arith.muli %26, %c256_i32 : i32
    %28 = tpu.iota {dimensions = array<i32: 1>} : vector<8x256xi32>
    %29 = vector.broadcast %27 : i32 to vector<8x256xi32>
    %30 = arith.addi %29, %28 : vector<8x256xi32>
    %c300_i32 = arith.constant 300 : i32
    %31 = vector.broadcast %c300_i32 : i32 to vector<8x256xi32>
    %32 = arith.cmpi slt, %30, %31 : vector<8x256xi32>
    %cst_13 = arith.constant 0.000000e+00 : f32
    %33 = vector.broadcast %cst_13 : f32 to vector<8x256xf32>
    %34 = arith.select %32, %24, %33 : vector<8x256xi1>, vector<8x256xf32>
    %c0_14 = arith.constant 0 : index
    %c0_15 = arith.constant 0 : index
    %c0_16 = arith.constant 0 : index
    %35 = vector.load %arg6[%c0_14, %c0_15, %c0_16] : memref<1x8x256xf32, #tpu.memory_space<vmem>>, vector<1x8x256xf32>
    %36 = vector.shape_cast %35 : vector<1x8x256xf32> to vector<8x256xf32>
    %37 = arith.addf %36, %34 : vector<8x256xf32>
    %c0_17 = arith.constant 0 : index
    %c0_18 = arith.constant 0 : index
    %c0_19 = arith.constant 0 : index
    %38 = vector.load %arg6[%c0_17, %c0_18, %c0_19] : memref<1x8x256xf32, #tpu.memory_space<vmem>>, vector<1x8x256xf32>
    %39 = vector.shape_cast %38 : vector<1x8x256xf32> to vector<8x256xf32>
    %40 = vector.shape_cast %37 : vector<8x256xf32> to vector<1x8x256xf32>
    tpu.vector_store %arg6[%c0_17, %c0_18, %c0_19], %40 {strides = array<i32>} : memref<1x8x256xf32, #tpu.memory_space<vmem>>, vector<1x8x256xf32>,
    return
  }
  func.func @transform_0(%arg0: i32, %arg1: i32) -> (i32, i32) {
    %c0_i32 = arith.constant 0 : i32
    %c0_i32_0 = arith.constant 0 : i32
    %c0_i32_1 = arith.constant 0 : i32
    return %c0_i32, %c0_i32_0 : i32, i32
  }
  func.func @transform_1(%arg0: i32, %arg1: i32) -> (i32, i32) {
    %c0_i32 = arith.constant 0 : i32
    %c0_i32_0 = arith.constant 0 : i32
    %c0_i32_1 = arith.constant 0 : i32
    return %c0_i32, %c0_i32_0 : i32, i32
  }
  func.func @transform_2(%arg0: i32, %arg1: i32) -> (i32, i32) {
    %c1_i32 = arith.constant 1 : i32
    %0 = arith.muli %arg0, %c1_i32 : i32
    %1 = arith.addi %0, %arg1 : i32
    %c0_i32 = arith.constant 0 : i32
    %c0_i32_0 = arith.constant 0 : i32
    return %c0_i32, %1 : i32, i32
  }
  func.func @transform_3(%arg0: i32, %arg1: i32) -> (i32, i32) {
    %c1_i32 = arith.constant 1 : i32
    %0 = arith.muli %arg0, %c1_i32 : i32
    %1 = arith.addi %0, %arg1 : i32
    %c0_i32 = arith.constant 0 : i32
    %c0_i32_0 = arith.constant 0 : i32
    return %c0_i32, %1 : i32, i32
  }
  func.func @transform_4(%arg0: i32, %arg1: i32) -> (i32, i32, i32) {
    %c0_i32 = arith.constant 0 : i32
    %c0_i32_0 = arith.constant 0 : i32
    %c0_i32_1 = arith.constant 0 : i32
    return %arg0, %c0_i32, %c0_i32_0 : i32, i32, i32
  }
}

</mosaic_0001>

<bundles_post_ra>
// kernel: dpsh_loss.1
= control target key start
LH: loop header
LB: loop body
LE: loop exit
PB: predicated region body
PF: predicated region fallthrough
CT: control target
= control target key end

     0   :  { %s771_s15 = smov 0   ;;  %s773_s16 = smov 0   ;;  %s857_s0 = inlined_call_operand.vmem [shape: f32[8,32], index: 0, kind: input, shape index: {}]   ;;  %s858_s1 = inlined_call_operand.vmem [shape: f32[8,16], index: 1, kind: input, shape index: {}]   ;;  %s859_s2 = inlined_call_operand.vmem [shape: f32[32,512], index: 2, kind: input, shape index: {}]   ;;  %s860_s3 = inlined_call_operand.vmem [shape: f32[16,512], index: 3, kind: input, shape index: {}]   ;;  %s861_s4 = inlined_call_operand.vmem [shape: f32[2,8,256], index: 4, kind: output, shape index: {}]  }
   0x1   :  { %s775_s17 = smov 0   ;;  %s777_s18 = smov 0  }
   0x2   :  { %s779_s19 = smov 0  }
   0x3 LB: > { %s26_s20 = sadd.s32 1, %s739_s18  ;;  %p84_p1 = scmp.ne.s32.totalorder %s731_s16, %s727_s15  ;;  %s743_s19 = sphi %s779_s19, %s14_s19   ;;  %s739_s18 = sphi %s777_s18, %s866_s18   ;;  %s735_s17 = sphi %s775_s17, %s865_s17   ;;  %s731_s16 = sphi %s773_s16, %s864_s16   ;;  %s727_s15 = sphi %s771_s15, %s863_s15  }
   0x4   : > { %p28_p0 = scmp.ge.s32.totalorder %s26_s20, 2  ;;  %p85_p2 = scmp.eq.s32.totalorder %s743_s19, 0 }
   0x5   : > { %s77_s23 = sadd.s32 1, %s731_s16  ;;  %p622_p5 = scmp.ge.s32.totalorder %s743_s19, 2 }
   0x6   : > { %s868_s20 = smov (%p28_p0, %s26_s20), 0  ;;  %p802_p3 = por %p85_p2, %p84_p1 }
   0x7   : > { %s74_s22 = ssub.s32 %s739_s18, %s868_s20  ;;  %170 = sbr.rel (%p622_p5) target bundleno = 29 (0x1d), region = 24 }
   0x8   : > { %p75_p4 = scmp.eq.s32.totalorder %s74_s22, 0 }
   0xa   : > { %s810_s24 = scalar_select %p75_p4, %s731_s16, %s77_s23  }
   0xe   : > { %173 = sbr.rel (!%p802_p3) target bundleno = 22 (0x16), region = 28  ;;  %s175_s25 = sand.u32 (%p802_p3), 1, %s731_s16  }
   0xf   : > { %s641_s26 = sshll.u32 (%p802_p3), %s739_s18, 4  ;;  %s623_s27 = sshll.u32 (%p802_p3), %s175_s25, 6 }
  0x10   : > { %s181_s30 = scalar_lea.vmem (%p802_p3), %s859_s2, %s641_s26  ;;  %s177_s5 = scalar_lea.vmem (%p802_p3), [#allocation2], %s623_s27 }
  0x11   : > { %v194_v0 = vld [vmem:[%s181_s30] sm:$0xff] (%p802_p3)  ;;  %v196_v1 = vld [vmem:[%s181_s30 + $0x8] sm:$0xff] (%p802_p3) }
  0x12   : > { %v198_v2 = vld [vmem:[%s181_s30 + $0x20] sm:$0xff] (%p802_p3)  ;;  %195 = vst [vmem:[%s177_s5] sm:$0xff] (%p802_p3), %v194_v0  ;;  %197 = vst [vmem:[%s177_s5 + $0x8] sm:$0xff] (%p802_p3), %v196_v1  ;;  %v200_v3 = vld [vmem:[%s181_s30 + $0x28] sm:$0xff] (%p802_p3) }
  0x13   : > { %199 = vst [vmem:[%s177_s5 + $0x10] sm:$0xff] (%p802_p3), %v198_v2  ;;  %v202_v4 = vld [vmem:[%s181_s30 + $0x40] sm:$0xff] (%p802_p3)  ;;  %v204_v5 = vld [vmem:[%s181_s30 + $0x48] sm:$0xff] (%p802_p3)  ;;  %201 = vst [vmem:[%s177_s5 + $0x18] sm:$0xff] (%p802_p3), %v200_v3 }
  0x14   : > { %203 = vst [vmem:[%s177_s5 + $0x20] sm:$0xff] (%p802_p3), %v202_v4  ;;  %205 = vst [vmem:[%s177_s5 + $0x28] sm:$0xff] (%p802_p3), %v204_v5  ;;  %v206_v6 = vld [vmem:[%s181_s30 + $0x60] sm:$0xff] (%p802_p3)  ;;  %v208_v7 = vld [vmem:[%s181_s30 + $0x68] sm:$0xff] (%p802_p3) }
  0x15   : > { %207 = vst [vmem:[%s177_s5 + $0x30] sm:$0xff] %v206_v6  ;;  %209 = vst [vmem:[%s177_s5 + $0x38] sm:$0xff] %v208_v7 }
  0x16 PF: > { %215 = sbr.rel (!%p802_p3) target bundleno = 29 (0x1d), region = 51  ;;  %s217_s6 = sand.u32 (%p802_p3), 1, %s731_s16  }
  0x17   : > { %s642_s7 = sshll.u32 (%p802_p3), %s739_s18, 4  ;;  %s626_s8 = sshll.u32 (%p802_p3), %s217_s6, 5 }
  0x18   : > { %s223_s11 = scalar_lea.vmem (%p802_p3), %s860_s3, %s642_s7  ;;  %s219_s12 = scalar_lea.vmem (%p802_p3), [#allocation3], %s626_s8 }
  0x19   : > { %v236_v8 = vld [vmem:[%s223_s11] sm:$0xff] (%p802_p3)  ;;  %v238_v9 = vld [vmem:[%s223_s11 + $0x8] sm:$0xff] (%p802_p3) }
  0x1a   : > { %v240_v10 = vld [vmem:[%s223_s11 + $0x20] sm:$0xff] (%p802_p3)  ;;  %237 = vst [vmem:[%s219_s12] sm:$0xff] (%p802_p3), %v236_v8  ;;  %239 = vst [vmem:[%s219_s12 + $0x8] sm:$0xff] (%p802_p3), %v238_v9  ;;  %v242_v11 = vld [vmem:[%s223_s11 + $0x28] sm:$0xff] (%p802_p3) }
  0x1b   : > { %241 = vst [vmem:[%s219_s12 + $0x10] sm:$0xff] (%p802_p3), %v240_v10  ;;  %243 = vst [vmem:[%s219_s12 + $0x18] sm:$0xff] (%p802_p3), %v242_v11 }
  0x1d PF: > { %p629_p6 = scmp.ge.s32.totalorder %s743_s19, 1  ;;  %p248_p7 = scmp.lt.s32.totalorder %s743_s19, 3 }
  0x1f   : > { %p249_p8 = pnand %p629_p6, %p248_p7 }
  0x20   : > { %s255_s13 = sand.u32 (!%p249_p8), 1, %s727_s15   ;;  %v745_v12 = vmov (!%p249_p8), 0.0   ;;  %v307_v31 = vld [vmem:[%s858_s1] sm:$0xff] (!%p249_p8)  ;;  %vm397_vm0 = vcmask (!%p249_p8), 130048   ;;  %vm320_vm1 = vcmask (!%p249_p8), 261120   ;;  %v514_v52 = vlaneseq (!%p249_p8)  ;;  %s638_s28 = sshll.u32 (!%p249_p8), %s735_s17, 8 }
  0x21   : > { %252 = sbr.rel (%p249_p8) target bundleno = 300 (0x12c), region = 74  ;;  %s630_s14 = sshll.u32 (!%p249_p8), %s255_s13, 6  ;;  %388 = vmatprep.mubr.f32.mxu0 (!%p249_p8), %v745_v12  ;;  %465 = vmatprep.mubr.f32.mxu1 (!%p249_p8), %v745_v12  ;;  %v306_v32 = vld [vmem:[%s857_s0] sm:$0xff] (!%p249_p8)  ;;  %v517_v60 = vstv (!%p249_p8), %s638_s28 }
  0x22   : > { %s631_s21 = sshll.u32 (!%p249_p8), %s255_s13, 5  ;;  %s257_s22 = scalar_lea.vmem (!%p249_p8), [#allocation2], %s630_s14  ;;  %v515_v55 = vand.u32 (!%p249_p8), 127, %v514_v52 }
  0x23   : > { %v309_v13 = vld [vmem:[%s257_s22 + $0x8] sm:$0xff] (!%p249_p8)  ;;  %v311_v14 = vld [vmem:[%s257_s22 + $0x18] sm:$0xff] (!%p249_p8)  ;;  %v308_v15 = vld [vmem:[%s257_s22] sm:$0xff] (!%p249_p8)  ;;  %s264_s23 = scalar_lea.vmem (!%p249_p8), [#allocation3], %s631_s21  ;;  %p295_p9 = scmp.lt.s32.totalorder (!%p249_p8), %s735_s17, 1 }
  0x24   : > { %v644_v16 = vpack.c.bf16 (!%p249_p8), %v311_v14, %v309_v13  ;;  %v310_v17 = vld [vmem:[%s257_s22 + $0x10] sm:$0xff] (!%p249_p8)  ;;  %v313_v18 = vld [vmem:[%s257_s22 + $0x28] sm:$0xff] (!%p249_p8)  ;;  %v315_v19 = vld [vmem:[%s257_s22 + $0x38] sm:$0xff] (!%p249_p8)  ;;  %v516_v58 = vadd.s32 (!%p249_p8), 128, %v515_v55  ;;  %v518_v3 = vadd.s32 (!%p249_p8), %v517_v60, %v515_v55 }
  0x25   : > { %v646_v20 = vpack.c.bf16 (!%p249_p8), %v310_v17, %v308_v15  ;;  %v648_v21 = vpack.c.bf16 (!%p249_p8), %v315_v19, %v313_v18  ;;  %v317_v22 = vld [vmem:[%s264_s23 + $0x8] sm:$0xff] (!%p249_p8)  ;;  %v319_v23 = vld [vmem:[%s264_s23 + $0x18] sm:$0xff] (!%p249_p8)  ;;  %v312_v24 = vld [vmem:[%s257_s22 + $0x20] sm:$0xff] (!%p249_p8) }
  0x26   : > { %645 = vmatprep.subr.bf16.mxu0 (!%p249_p8), %v644_v16  ;;  %v652_v25 = vpack.c.bf16 (!%p249_p8), %v319_v23, %v317_v22  ;;  %v314_v26 = vld [vmem:[%s257_s22 + $0x30] sm:$0xff] (!%p249_p8)  ;;  %v316_v27 = vld [vmem:[%s264_s23] sm:$0xff] (!%p249_p8)  ;;  %v519_v4 = vadd.s32 (!%p249_p8), %v517_v60, %v516_v58  ;;  %vm520_vm6 = vcmp.lt.s32.totalorder (!%p249_p8), %v518_v3, 300 }
  0x27   : > { %v318_v28 = vld [vmem:[%s264_s23 + $0x10] sm:$0xff] (!%p249_p8)  ;;  %647 = vmatpush1.bf16.msra.mxu0 (!%p249_p8), %v646_v20  ;;  %v650_v29 = vpack.c.bf16 (!%p249_p8), %v314_v26, %v312_v24 }
  0x28   : > { %v654_v30 = vpack.c.bf16 %v318_v28, %v316_v27  ;;  %649 = vmatprep.subr.bf16.mxu0 %v648_v21  ;;  %653 = vmatprep.subr.bf16.mxu1 %v652_v25  ;;  %s870_s17 = smov (!%p295_p9, %s735_s17), 1  ;;  %vm521_vm7 = vcmp.lt.s32.totalorder %v519_v4, 300 }
  0x29   : > { %s643_s29 = sshll.u32 %s870_s17, 4 }
  0x2a   : > { %655 = vmatpush1.bf16.msra.mxu1 %v654_v30  ;;  %s299_s6 = scalar_lea.vmem %s861_s4, %s643_s29 }
  0x2b   : > { %651 = vmatpush1.bf16.msra.mxu0 %v650_v29 }
  0x2d   : > { %635 = vmatmul.mubr.msk.f32.vlgmr.msra.gmra.mrb[0].mxu1 %vm397_vm0, %v307_v31 }
  0x2e   : > { %634 = vmatmul.mubr.msk.f32.vlgmr.msra.gmra.mrb[0].mxu0 %vm320_vm1, %v306_v32 }
 0x100   : > { %v467_v33 = vpop.f32.mrb[0].mxu1 }
 0x101   : > { %vm472_vm2 = vcmp.gt.f32.partialorder %v467_v33, 0.0  ;;  %v469_v34 = vpop.f32.mrb[1].mxu1  ;;  %v390_v35 = vpop.f32.mrb[0].mxu0 }
 0x102   : > { %v636_v36 = vsel %vm472_vm2, 1.0, %v745_v12  ;;  %vm473_vm3 = vcmp.gt.f32.partialorder %v469_v34, 0.0  ;;  %v395_v37 = vmul.f32 0.5, %v390_v35  ;;  %v392_v38 = vpop.f32.mrb[1].mxu0 }
 0x103   : > { %v637_v39 = vsel %vm473_vm3, 1.0, %v745_v12  ;;  %v396_v40 = vmul.f32 0.5, %v392_v38 }
 0x104   : > { %v478_v41 = vand.u32 2147483647, %v395_v37  ;;  %v508_v42 = vmul.f32 %v636_v36, %v395_v37  ;;  %v504_v5 = vmax.f32 %v395_v37, 0.0 }
 0x105   : > { %v479_v43 = vand.u32 2147483647, %v396_v40  ;;  %v509_v44 = vmul.f32 %v637_v39, %v396_v40  ;;  %v505_v9 = vmax.f32 %v396_v40, 0.0 }
 0x106   : > { %v480_v45 = vsub.f32 0.0, %v478_v41 }
 0x107   : > { %v481_v46 = vsub.f32 0.0, %v479_v43 }
 0x108   : > { %v482_v47 = vmul.f32 1.442695, %v480_v45 }
 0x109   : > { %v484_v48 = vmul.f32 1.442695, %v481_v46 }
 0x10a   : > { %697 = vpow2.f32 %v482_v47 }
 0x10b   : > { %699 = vpow2.f32 %v484_v48 }
 0x114   : > { %v698_v49 = vpop.eup %697 }
 0x115   : > { %v700_v50 = vpop.eup %699  ;;  %v486_v51 = vadd.f32 1.0, %v698_v49  ;;  %v489_v54 = vmul.f32 -0.5, %v698_v49  ;;  %v492_v59 = vand.u32 2147483647, %v698_v49 }
 0x116   : > { %v495_v53 = vadd.f32 1.0, %v700_v50  ;;  %v498_v56 = vmul.f32 -0.5, %v700_v50  ;;  %v501_v62 = vand.u32 2147483647, %v700_v50 }
 0x117   : > { %701 = vlog2.f32 %v486_v51  ;;  %v490_v57 = vadd.f32 1.0, %v489_v54  ;;  %vm493_vm4 = vcmp.lt.f32.partialorder %v492_v59, 0.0004427343 }
 0x118   : > { %703 = vlog2.f32 %v495_v53  ;;  %v499_v61 = vadd.f32 1.0, %v498_v56  ;;  %vm502_vm5 = vcmp.lt.f32.partialorder %v501_v62, 0.0004427343 }
 0x119   : > { %v491_v2 = vmul.f32 %v698_v49, %v490_v57 }
 0x11a   : > { %v500_v7 = vmul.f32 %v700_v50, %v499_v61 }
 0x121   : > { %v702_v63 = vpop.eup %701 }
 0x122   : > { %v704_v0 = vpop.eup %703  ;;  %v488_v1 = vmul.f32 0.6931472, %v702_v63 }
 0x123   : > { %v497_v6 = vmul.f32 0.6931472, %v704_v0 }
 0x124   : > { %v494_v8 = vsel %vm493_vm4, %v491_v2, %v488_v1 }
 0x125   : > { %v506_v10 = vadd.f32 %v504_v5, %v494_v8  ;;  %v503_v11 = vsel %vm502_vm5, %v500_v7, %v497_v6 }
 0x126   : > { %v507_v12 = vadd.f32 %v505_v9, %v503_v11 }
 0x127   : > { %v510_v13 = vsub.f32 %v506_v10, %v508_v42 }
 0x128   : > { %v511_v14 = vsub.f32 %v507_v12, %v509_v44 }
 0x129   : > { %v522_v15 = vsel %vm520_vm6, %v510_v13, 0.0 }
 0x12a   : > { %v523_v16 = vsel %vm521_vm7, %v511_v14, 0.0  ;;  %528 = vst [vmem:[%s299_s6] sm:$0xff] %v522_v15 }
 0x12b   : > { %529 = vst [vmem:[%s299_s6 + $0x8] sm:$0xff] %v523_v16 }
 0x12c PF: > { %s14_s19 = sadd.s32 1, %s743_s19   ;;  %s863_s15 = smov %s731_s16 }
 0x12d   : > { %p11_p10 = scmp.ge.s32.totalorder %s14_s19, 4   ;;  %s864_s16 = smov %s810_s24 }
 0x12e   : > { %s865_s17 = smov %s739_s18  ;;  %s866_s18 = smov %s868_s20 }
 0x12f   :  { %13 = sbr.rel (!%p11_p10) target bundleno = 3 (0x3), region = 129 }

</bundles_post_ra>
